<compile_context>
chip_gen: v5e
topology: v5e:2x2
jax: 0.10.0
libtpu: 0.0.40
codegen_flags: <defaults>
</compile_context>

<pallas_src>
import jax
import jax.numpy as jnp
from jax.experimental import pallas as pl
from jax.experimental.pallas import tpu as pltpu


def _round_up(n, m):
    return ((n + m - 1) // m) * m


def _mlp_kernel(x_ref, w1_ref, b1_ref, w2_ref, b2_ref, w3_ref, b3_ref, o_ref):
    # Feature-major forward pass. Shapes inside the kernel:
    #   x_ref : [3, TB]      (batch on the lane axis)
    #   w1    : [16, 3]  b1: [16, 1]
    #   w2    : [8, 16]  b2: [8, 1]
    #   w3    : [3, 8]   b3: [3, 1]
    #   o_ref : [3, TB]
    x = x_ref[...]
    h1 = jnp.dot(w1_ref[...], x, preferred_element_type=jnp.float32) + b1_ref[...]
    h1 = jnp.maximum(h1, 0.0)                                        # [16, TB]
    h2 = jnp.dot(w2_ref[...], h1, preferred_element_type=jnp.float32) + b2_ref[...]
    h2 = jnp.maximum(h2, 0.0)                                        # [8, TB]
    out = jnp.dot(w3_ref[...], h2, preferred_element_type=jnp.float32) + b3_ref[...]
    o_ref[...] = out.astype(o_ref.dtype)                             # [3, TB]


def dengue_net_forward(x, params, *, tile_b=1024):
    """x: [B, 3] float32. params: w1[16,3], b1[16,1], w2[8,16], b2[8,1], w3[3,8], b3[3,1].

    Returns [B, 3] float32, identical semantics to the PyTorch module.
    """
    B = x.shape[0]
    w1, b1 = params["w1"], params["b1"]
    w2, b2 = params["w2"], params["b2"]
    w3, b3 = params["w3"], params["b3"]

    # Lane-dense batch tile: multiple of 128, capped at `tile_b`.
    tb = min(tile_b, _round_up(B, 128))
    b_pad = _round_up(B, tb)
    num_tiles = b_pad // tb

    # One-time layout change in the wrapper: [B,3] -> [3, B_pad] (zero-padded lanes).
    xt = jnp.pad(x.astype(jnp.float32).T, ((0, 0), (0, b_pad - B)))

    # Weights/biases are VMEM-resident: their index_map ignores the batch index.
    resident = lambda shape: pl.BlockSpec(shape, lambda i: (0,) * len(shape))

    out_t = pl.pallas_call(
        _mlp_kernel,
        out_shape=jax.ShapeDtypeStruct((3, b_pad), jnp.float32),
        grid=(num_tiles,),
        in_specs=[
            pl.BlockSpec((3, tb), lambda i: (0, i)),   # x tile
            resident(w1.shape), resident(b1.shape),
            resident(w2.shape), resident(b2.shape),
            resident(w3.shape), resident(b3.shape),
        ],
        out_specs=pl.BlockSpec((3, tb), lambda i: (0, i)),
        compiler_params=pltpu.CompilerParams(
            dimension_semantics=("parallel",),
        ),
    )(xt, w1, b1, w2, b2, w3, b3)

    # Slice off the lane padding and return batch-major [B, 3].
    return out_t[:, :B].T


def init_params(key):
    """Deterministic synthetic init matching PyTorch nn.Linear defaults.

    Weights stored in PyTorch layout [out_features, in_features];
    biases as [out_features, 1] (broadcast over the lane/batch axis).
    """
    ks = jax.random.split(key, 6)

    def linear(kw, kb, fan_in, fan_out):
        bound = 1.0 / jnp.sqrt(fan_in)
        w = jax.random.uniform(kw, (fan_out, fan_in), jnp.float32, -bound, bound)
        b = jax.random.uniform(kb, (fan_out, 1), jnp.float32, -bound, bound)
        return w, b

    w1, b1 = linear(ks[0], ks[1], 3, 16)
    w2, b2 = linear(ks[2], ks[3], 16, 8)
    w3, b3 = linear(ks[4], ks[5], 8, 3)
    return {"w1": w1, "b1": b1, "w2": w2, "b2": b2, "w3": w3, "b3": b3}


def reference_forward(x, p):
    # Pure-JAX reference in standard batch-major form.
    h1 = jnp.maximum(x @ p["w1"].T + p["b1"].T, 0.0)
    h2 = jnp.maximum(h1 @ p["w2"].T + p["b2"].T, 0.0)
    return h2 @ p["w3"].T + p["b3"].T


if __name__ == "__main__":
    key = jax.random.PRNGKey(0)
    k_x, k_p = jax.random.split(key)

    B = 8  # NOTE: at tiny B the run is launch-overhead-bound; tiling pays off at B in the thousands.
    x = jax.random.normal(k_x, (B, 3), jnp.float32)
    params = init_params(k_p)

    out = dengue_net_forward(x, params)
    out = jax.block_until_ready(out)

    ref = reference_forward(x, params)
    assert out.shape == (B, 3)
    assert jnp.allclose(out, ref, atol=1e-5, rtol=1e-5)

    # Also exercise a multi-tile batch (last tile padded) to validate the grid path.
    B2 = 2500
    x2 = jax.random.normal(k_x, (B2, 3), jnp.float32)
    out2 = jax.block_until_ready(dengue_net_forward(x2, params))
    ref2 = reference_forward(x2, params)
    assert out2.shape == (B2, 3)
    assert jnp.allclose(out2, ref2, atol=1e-4, rtol=1e-4)

    print("KERNEL_OK")
</pallas_src>

<mosaic_0001>
module attributes {stable_mosaic.version = 11 : i64} {
  func.func @_mlp_kernel(%arg0: i32, %arg1: memref<3x128xf32, #tpu.memory_space<vmem>>, %arg2: memref<16x3xf32, #tpu.memory_space<vmem>>, %arg3: memref<16x1xf32, #tpu.memory_space<vmem>>, %arg4: memref<8x16xf32, #tpu.memory_space<vmem>>, %arg5: memref<8x1xf32, #tpu.memory_space<vmem>>, %arg6: memref<3x8xf32, #tpu.memory_space<vmem>>, %arg7: memref<3x1xf32, #tpu.memory_space<vmem>>, %arg8: memref<3x128xf32, #tpu.memory_space<vmem>>) attributes {dimension_semantics = [#tpu.dimension_semantics<parallel>], iteration_bounds = array<i64: 1>, scalar_prefetch = 0 : i64, scratch_operands = 0 : i64, tpu.core_type = #tpu.core_type<tc>, window_params = [{transform_indices = @transform_0, window_bounds = array<i64: 3, 128>}, {pipeline_mode = #tpu.pipeline_mode<synchronous>, transform_indices = @transform_1, window_bounds = array<i64: 16, 3>}, {pipeline_mode = #tpu.pipeline_mode<synchronous>, transform_indices = @transform_2, window_bounds = array<i64: 16, 1>}, {pipeline_mode = #tpu.pipeline_mode<synchronous>, transform_indices = @transform_3, window_bounds = array<i64: 8, 16>}, {pipeline_mode = #tpu.pipeline_mode<synchronous>, transform_indices = @transform_4, window_bounds = array<i64: 8, 1>}, {pipeline_mode = #tpu.pipeline_mode<synchronous>, transform_indices = @transform_5, window_bounds = array<i64: 3, 8>}, {pipeline_mode = #tpu.pipeline_mode<synchronous>, transform_indices = @transform_6, window_bounds = array<i64: 3, 1>}, {transform_indices = @transform_7, window_bounds = array<i64: 3, 128>}]} {
    %c0 = arith.constant 0 : index
    %c0_0 = arith.constant 0 : index
    %0 = vector.load %arg1[%c0, %c0_0] : memref<3x128xf32, #tpu.memory_space<vmem>>, vector<3x128xf32>
    %c0_1 = arith.constant 0 : index
    %c0_2 = arith.constant 0 : index
    %1 = vector.load %arg2[%c0_1, %c0_2] : memref<16x3xf32, #tpu.memory_space<vmem>>, vector<16x3xf32>
    %cst = arith.constant dense<0.000000e+00> : vector<16x128xf32>
    %2 = tpu.matmul %1, %0, %cst {dimension_numbers = #tpu.dot_dimension_numbers<[1], [0], [0], [1], [0, 0, 1, 1], [], []>} : vector<16x3xf32>, vector<3x128xf32>, vector<16x128xf32> -> vector<16x128xf32>
    %c0_3 = arith.constant 0 : index
    %c0_4 = arith.constant 0 : index
    %3 = vector.load %arg3[%c0_3, %c0_4] : memref<16x1xf32, #tpu.memory_space<vmem>>, vector<16x1xf32>
    %4 = vector.broadcast %3 : vector<16x1xf32> to vector<16x128xf32>
    %5 = arith.addf %2, %4 : vector<16x128xf32>
    %cst_5 = arith.constant 0.000000e+00 : f32
    %6 = vector.broadcast %cst_5 : f32 to vector<16x128xf32>
    %7 = arith.maximumf %5, %6 : vector<16x128xf32>
    %c0_6 = arith.constant 0 : index
    %c0_7 = arith.constant 0 : index
    %8 = vector.load %arg4[%c0_6, %c0_7] : memref<8x16xf32, #tpu.memory_space<vmem>>, vector<8x16xf32>
    %cst_8 = arith.constant dense<0.000000e+00> : vector<8x128xf32>
    %9 = tpu.matmul %8, %7, %cst_8 {dimension_numbers = #tpu.dot_dimension_numbers<[1], [0], [0], [1], [0, 0, 1, 1], [], []>} : vector<8x16xf32>, vector<16x128xf32>, vector<8x128xf32> -> vector<8x128xf32>
    %c0_9 = arith.constant 0 : index
    %c0_10 = arith.constant 0 : index
    %10 = vector.load %arg5[%c0_9, %c0_10] : memref<8x1xf32, #tpu.memory_space<vmem>>, vector<8x1xf32>
    %11 = vector.broadcast %10 : vector<8x1xf32> to vector<8x128xf32>
    %12 = arith.addf %9, %11 : vector<8x128xf32>
    %cst_11 = arith.constant 0.000000e+00 : f32
    %13 = vector.broadcast %cst_11 : f32 to vector<8x128xf32>
    %14 = arith.maximumf %12, %13 : vector<8x128xf32>
    %c0_12 = arith.constant 0 : index
    %c0_13 = arith.constant 0 : index
    %15 = vector.load %arg6[%c0_12, %c0_13] : memref<3x8xf32, #tpu.memory_space<vmem>>, vector<3x8xf32>
    %cst_14 = arith.constant dense<0.000000e+00> : vector<3x128xf32>
    %16 = tpu.matmul %15, %14, %cst_14 {dimension_numbers = #tpu.dot_dimension_numbers<[1], [0], [0], [1], [0, 0, 1, 1], [], []>} : vector<3x8xf32>, vector<8x128xf32>, vector<3x128xf32> -> vector<3x128xf32>
    %c0_15 = arith.constant 0 : index
    %c0_16 = arith.constant 0 : index
    %17 = vector.load %arg7[%c0_15, %c0_16] : memref<3x1xf32, #tpu.memory_space<vmem>>, vector<3x1xf32>
    %18 = vector.broadcast %17 : vector<3x1xf32> to vector<3x128xf32>
    %19 = arith.addf %16, %18 : vector<3x128xf32>
    %c0_17 = arith.constant 0 : index
    %c0_18 = arith.constant 0 : index
    %20 = vector.load %arg8[%c0_17, %c0_18] : memref<3x128xf32, #tpu.memory_space<vmem>>, vector<3x128xf32>
    tpu.vector_store %arg8[%c0_17, %c0_18], %19 {strides = array<i32>} : memref<3x128xf32, #tpu.memory_space<vmem>>, vector<3x128xf32>,
    return
  }
  func.func @transform_0(%arg0: i32) -> (i32, i32) {
    %c0_i32 = arith.constant 0 : i32
    %c0_i32_0 = arith.constant 0 : i32
    return %c0_i32, %arg0 : i32, i32
  }
  func.func @transform_1(%arg0: i32) -> (i32, i32) {
    %c0_i32 = arith.constant 0 : i32
    %c0_i32_0 = arith.constant 0 : i32
    %c0_i32_1 = arith.constant 0 : i32
    return %c0_i32, %c0_i32_0 : i32, i32
  }
  func.func @transform_2(%arg0: i32) -> (i32, i32) {
    %c0_i32 = arith.constant 0 : i32
    %c0_i32_0 = arith.constant 0 : i32
    %c0_i32_1 = arith.constant 0 : i32
    return %c0_i32, %c0_i32_0 : i32, i32
  }
  func.func @transform_3(%arg0: i32) -> (i32, i32) {
    %c0_i32 = arith.constant 0 : i32
    %c0_i32_0 = arith.constant 0 : i32
    %c0_i32_1 = arith.constant 0 : i32
    return %c0_i32, %c0_i32_0 : i32, i32
  }
  func.func @transform_4(%arg0: i32) -> (i32, i32) {
    %c0_i32 = arith.constant 0 : i32
    %c0_i32_0 = arith.constant 0 : i32
    %c0_i32_1 = arith.constant 0 : i32
    return %c0_i32, %c0_i32_0 : i32, i32
  }
  func.func @transform_5(%arg0: i32) -> (i32, i32) {
    %c0_i32 = arith.constant 0 : i32
    %c0_i32_0 = arith.constant 0 : i32
    %c0_i32_1 = arith.constant 0 : i32
    return %c0_i32, %c0_i32_0 : i32, i32
  }
  func.func @transform_6(%arg0: i32) -> (i32, i32) {
    %c0_i32 = arith.constant 0 : i32
    %c0_i32_0 = arith.constant 0 : i32
    %c0_i32_1 = arith.constant 0 : i32
    return %c0_i32, %c0_i32_0 : i32, i32
  }
  func.func @transform_7(%arg0: i32) -> (i32, i32) {
    %c0_i32 = arith.constant 0 : i32
    %c0_i32_0 = arith.constant 0 : i32
    return %c0_i32, %arg0 : i32, i32
  }
}

</mosaic_0001>

<bundles_post_ra>
// kernel: tpu_custom_call.1
= control target key start
LH: loop header
LB: loop body
LE: loop exit
PB: predicated region body
PF: predicated region fallthrough
CT: control target
= control target key end

     0   :  { %vm49_vm0 = vcmask 1042432   ;;  %vm42_vm1 = vcmask 23552   ;;  %s266_s0 = inlined_call_operand.vmem [shape: f32[3,128], index: 0, kind: input, shape index: {}]   ;;  %s267_s1 = inlined_call_operand.vmem [shape: f32[16,3], index: 1, kind: input, shape index: {}]   ;;  %s268_s2 = inlined_call_operand.vmem [shape: f32[16,1], index: 2, kind: input, shape index: {}]   ;;  %s269_s3 = inlined_call_operand.vmem [shape: f32[8,16], index: 3, kind: input, shape index: {}]   ;;  %s270_s4 = inlined_call_operand.vmem [shape: f32[8,1], index: 4, kind: input, shape index: {}]   ;;  %s271_s5 = inlined_call_operand.vmem [shape: f32[3,8], index: 5, kind: input, shape index: {}]   ;;  %s272_s6 = inlined_call_operand.vmem [shape: f32[3,1], index: 6, kind: input, shape index: {}]   ;;  %s273_s7 = inlined_call_operand.hbm [shape: f32[3,128], index: 7, kind: output, shape index: {}]  }
   0x1   :  { %v27_v0 = vld [vmem:[%s266_s0] sm:$0x7]  ;;  %v29_v2 = vld [vmem:[%s267_s1 + $0x8] sm:$0xff] }
   0x2   :  { %v28_v1 = vld [vmem:[%s267_s1] sm:$0xff]  ;;  %158 = vmatpush.msk.msra.mxu0 %vm49_vm0, %v27_v0  ;;  %163 = vmatpush.msk.msra.mxu3 %vm49_vm0, %v27_v0  ;;  %v31_v3 = vld [vmem:[%s268_s2 + $0x8] sm:$0xff] }
   0x3   :  { %12 = vsyncpa [#allocation3], 0  ;;  %159 = vmatmul.msk.f32.vlgmr.msra.gmra.mxu0 %vm42_vm1, %v28_v1  ;;  %160 = vmatmul.msk.f32.vlgmr.msra.gmra.mxu3 %vm42_vm1, %v29_v2  ;;  %v194_v4 = vmov 0   ;;  %v30_v5 = vld [vmem:[%s268_s2] sm:$0xff]  ;;  %vm85_vm2 = vcmask 130048   ;;  %vm117_vm3 = vcmask 64512  }
   0x4   :  { %166 = vset.pattern.permute.xlu0 %v194_v4  ;;  %167 = vset.pattern.permute.xlu1 %v194_v4  ;;  %v79_v6 = vld [vmem:[%s270_s4] sm:$0xff]  ;;  %s195_s14 = smov [#allocation2]  }
   0x5   :  { %39 = vperm.xlu0 %166, %v31_v3   ;;  %82 = vperm.xlu1 %167, %v79_v6   ;;  %v111_v7 = vld [vmem:[%s272_s6] sm:$0x7]  ;;  %s147_s15 = sshll.u32 %s195_s14, 4  ;;  %s148_s15 = int_to_ptr.vmem [resolvable:$true] %s147_s15 }
   0x6   :  { %v78_v16 = vld [vmem:[%s269_s3] sm:$0xff]  ;;  %s149_s3 = sshll.u32 %s273_s7, 4  ;;  %s150_s3 = int_to_ptr.hbm [resolvable:$true] %s149_s3 }
   0x7   :  { %v110_v21 = vld [vmem:[%s271_s5] sm:$0x7] }
   0xd   :  { %34 = vperm.xlu0 %166, %v30_v5   ;;  %114 = vperm.xlu1 %167, %v111_v7  }
  0x77   :  { %v40_v8 = vpop.permute.xlu0 %39  ;;  %v83_v17 = vpop.permute.xlu1 %82 }
  0x7f   :  { %v35_v9 = vpop.permute.xlu0 %34  ;;  %v115_v22 = vpop.permute.xlu1 %114 }
  0x80   :  { %v70_v10 = vpop.f32.mrf.mxu0 }
  0x81   :  { %v71_v12 = vadd.f32 %v70_v10, %v35_v9 }
  0x83   :  { %v76_v15 = vmax.f32 %v71_v12, 0.0 }
  0x86   :  { %v73_v11 = vpop.f32.mrf.mxu3 }
  0x87   :  { %v74_v13 = vadd.f32 %v73_v11, %v40_v8 }
  0x89   :  { %v77_v14 = vmax.f32 %v74_v13, 0.0 }
  0x8b   :  { %103 = vmatpush.msra.mxu1 %v77_v14 }
  0x8d   :  { %104 = vmatpush.msra.mxu1 %v76_v15 }
  0x8e   :  { %161 = vmatmul.msk.f32.vlgmr.msra.gmra.mxu1 %vm85_vm2, %v78_v16 }
 0x10b   :  { %v106_v18 = vpop.f32.mrf.mxu1 }
 0x10c   :  { %v107_v19 = vadd.f32 %v106_v18, %v83_v17 }
 0x10e   :  { %v109_v20 = vmax.f32 %v107_v19, 0.0 }
 0x110   :  { %136 = vmatpush.msra.mxu2 %v109_v20 }
 0x111   :  { %162 = vmatmul.msk.f32.vlgmr.msra.gmra.mxu2 %vm117_vm3, %v110_v21 }
 0x194   :  { %v138_v23 = vpop.f32.mrf.mxu2 }
 0x195   :  { %v139_v24 = vadd.f32 %v138_v23, %v115_v22 }
 0x197   :  { %141 = vst [vmem:[#allocation2] sm:$0x7] %v139_v24 }
 0x198   :  { %152 = dma.vmem_to_hbm [thread:$0]  %s148_s15, 64, %s150_s3, [#allocation3]  }
 0x199   :  { %192 = dma.done.wait [#allocation3], 64  }
 0x19a   :  { %193 = vsyncadd [#allocation3], 4294967232 }
 0x19b   :  { %157 = vsyncpa [#allocation3], 1 }

</bundles_post_ra>
